<compile_context>
chip_gen: v5e
topology: v5e:2x2
jax: 0.10.0
libtpu: 0.0.40
codegen_flags: <defaults>
</compile_context>

<pallas_src>
import functools

import jax
import jax.numpy as jnp
from jax.experimental import pallas as pl
from jax.experimental.pallas import tpu as pltpu

LEAKY_SLOPE = 0.01  # torch.nn.functional.leaky_relu default


def _pade_gen_kernel(xa_ref, mlp_ref, proj_ref, out_ref, *,
                     p_dim, fc, num_layers, n_pts):
    """Single gridless invocation.

    xa_ref   : (B, P+1) f32      -- [x, 1]; the ones column folds the projection bias.
    mlp_ref  : (4*fc+4, fc) f32  -- packed gating-MLP params:
                  rows [0, fc)      w1  (rows >= P are zero padding)
                  rows [fc, 2fc)    w2
                  rows [2fc, 3fc)   w3
                  rows [3fc, 4fc)   w4  (cols >= L are zero padding)
                  rows 4fc..4fc+3   b1, b2, b3, b4 (b4 cols >= L zero)
    proj_ref : (P+1, 2*L*N) bf16 -- basis-folded Pade projections:
                  lanes [l*N, (l+1)*N)         -> numerator_l   coefficients
                  lanes [(L+l)*N, (L+l+1)*N)   -> denominator_l coefficients
    out_ref  : (B, N) f32
    """
    f32 = jnp.float32
    bf16 = jnp.bfloat16

    xa = xa_ref[...].astype(bf16)                 # (B, P+1) bf16 for the MXU
    x = xa[:, :p_dim]                             # (B, P)

    def lrelu(v):
        return jnp.where(v >= 0, v, LEAKY_SLOPE * v)

    # ---- gating MLP: bf16 operands on the MXU, f32 accumulate + f32 epilogue ----
    w1 = mlp_ref[0:p_dim, :].astype(bf16)         # (P, fc)
    w2 = mlp_ref[fc:2 * fc, :].astype(bf16)       # (fc, fc)
    w3 = mlp_ref[2 * fc:3 * fc, :].astype(bf16)   # (fc, fc)
    w4 = mlp_ref[3 * fc:4 * fc, :].astype(bf16)   # (fc, fc), cols >= L are zero
    b1 = mlp_ref[4 * fc + 0:4 * fc + 1, :]        # (1, fc) f32
    b2 = mlp_ref[4 * fc + 1:4 * fc + 2, :]
    b3 = mlp_ref[4 * fc + 2:4 * fc + 3, :]
    b4 = mlp_ref[4 * fc + 3:4 * fc + 4, :]        # cols >= L are zero

    h1 = lrelu(jnp.dot(x, w1, preferred_element_type=f32) + b1)
    h2 = lrelu(jnp.dot(h1.astype(bf16), w2, preferred_element_type=f32) + b2)
    h3 = lrelu(jnp.dot(h2.astype(bf16), w3, preferred_element_type=f32) + b3)
    logits = (jnp.dot(h3.astype(bf16), w4, preferred_element_type=f32) + b4)[:, :num_layers]
    logits = logits - jnp.max(logits, axis=-1, keepdims=True)
    e = jnp.exp(logits)
    weights = e / jnp.sum(e, axis=-1, keepdims=True)   # (B, L), softmax over dim=-1

    # ---- fused Pade evaluation: ONE lane-dense MXU matmul for all layers ----
    fused = jnp.dot(xa, proj_ref[...], preferred_element_type=f32)  # (B, 2*L*N) f32
    ln = num_layers * n_pts
    num_blk = fused[:, :ln]                    # (B, L*N) numerators
    den_blk = fused[:, ln:]                    # (B, L*N) raw denominators
    # 1 + |Q| >= 1, so the EUP approximate reciprocal is well-conditioned.
    rational = num_blk * pl.reciprocal(1.0 + jnp.abs(den_blk), approx=True)

    # Weighted sum over layers; every slice starts on an N-lane (multiple-of-128)
    # boundary, so no lane rotates — each step is a tiny (B, N) FMA.
    sol = weights[:, 0:1] * rational[:, 0:n_pts]
    for l in range(1, num_layers):
        sol = sol + weights[:, l:l + 1] * rational[:, l * n_pts:(l + 1) * n_pts]
    out_ref[...] = sol


def pade_generative_model_2d(x, X, params, *, num_layers, num_terms):
    """x: (B, parameter_dim) f32; X: (N, 2) f32 grid coordinates -> (B, N) f32."""
    hp = jax.lax.Precision.HIGHEST
    B, P = x.shape
    N = X.shape[0]
    L, K = num_layers, num_terms
    fc = params["w1"].shape[1]
    assert params["w2"].shape == (fc, fc) and params["w3"].shape == (fc, fc)

    # Degree-2 2D monomial basis phi(X) = [1, u, v, u^2, uv, v^2], shape (K, N).
    u, v = X[:, 0], X[:, 1]
    basis = jnp.stack(
        [jnp.ones_like(u), u, v, u * u, u * v, v * v], axis=0
    ).astype(jnp.float32)
    assert basis.shape[0] == K

    # ---- parameter-only precompute (hoistable / constant-foldable by XLA) ----
    # num_l(X) = (x @ aw_l + ab_l) . phi(X) = [x, 1] @ ([aw_l; ab_l] @ phi(X)),
    # so folding the basis into the coefficient projections lets one matmul in
    # the kernel produce every layer's numerator and denominator, lane-dense.
    a_full = jnp.concatenate([params["aw"], params["ab"]], axis=0).reshape(P + 1, L, K)
    b_full = jnp.concatenate([params["bw"], params["bb"]], axis=0).reshape(P + 1, L, K)
    m_num = jnp.einsum("plk,kn->pln", a_full, basis, precision=hp).reshape(P + 1, L * N)
    m_den = jnp.einsum("plk,kn->pln", b_full, basis, precision=hp).reshape(P + 1, L * N)
    proj = jnp.concatenate([m_num, m_den], axis=1).astype(jnp.bfloat16)  # (P+1, 2*L*N)

    # Pack the gating MLP into a single array -> one HBM->VMEM DMA instead of 8.
    # Weight blocks sit at fc-row (multiple-of-8 sublane) offsets; w1/w4 are
    # zero-padded so every block is (fc, fc).
    w1p = jnp.zeros((fc, fc), jnp.float32).at[:P, :].set(params["w1"])
    w4p = jnp.zeros((fc, fc), jnp.float32).at[:, :L].set(params["w4"])
    b4p = jnp.zeros((1, fc), jnp.float32).at[:, :L].set(params["b4"])
    mlp_pack = jnp.concatenate(
        [w1p, params["w2"], params["w3"], w4p,
         params["b1"], params["b2"], params["b3"], b4p],
        axis=0)  # (4*fc + 4, fc) f32

    # Augment x with a ones column so the projection bias rides in the matmul.
    x_aug = jnp.concatenate([x, jnp.ones((B, 1), x.dtype)], axis=1)  # (B, P+1)

    flops = 2 * B * (P * fc + 2 * fc * fc + fc * L + (P + 1) * 2 * L * N) + 8 * B * L * N
    cost = pl.CostEstimate(
        flops=flops,
        transcendentals=B * L + B * L * N,
        bytes_accessed=x_aug.size * 4 + mlp_pack.size * 4 + proj.size * 2 + B * N * 4,
    )

    vmem = pl.BlockSpec(memory_space=pltpu.MemorySpace.VMEM)
    # Total resident data is a few tens of KB -> single gridless invocation
    # (a grid would just add ~0.35 us/step of overhead on v5e/v6e).
    # TODO(synk): for large B or N (e.g. to use both v7x TensorCores), add a
    # grid over B/N blocks with dimension_semantics=("parallel", ...).
    return pl.pallas_call(
        functools.partial(_pade_gen_kernel, p_dim=P, fc=fc,
                          num_layers=L, n_pts=N),
        out_shape=jax.ShapeDtypeStruct((B, N), jnp.float32),
        in_specs=[vmem, vmem, vmem],
        out_specs=vmem,
        cost_estimate=cost,
    )(x_aug, mlp_pack, proj)


def _reference(x, X, params, *, num_layers, num_terms):
    """Pure-JAX f32 reference of the original (unfused) forward pass."""
    hp = jax.lax.Precision.HIGHEST

    def lrelu(v):
        return jnp.where(v >= 0, v, LEAKY_SLOPE * v)

    h1 = lrelu(jnp.dot(x, params["w1"], precision=hp) + params["b1"])
    h2 = lrelu(jnp.dot(h1, params["w2"], precision=hp) + params["b2"])
    h3 = lrelu(jnp.dot(h2, params["w3"], precision=hp) + params["b3"])
    logits = jnp.dot(h3, params["w4"], precision=hp) + params["b4"]
    weights = jax.nn.softmax(logits, axis=-1)

    u, v = X[:, 0], X[:, 1]
    basis = jnp.stack([jnp.ones_like(u), u, v, u * u, u * v, v * v], axis=0)
    a_all = jnp.dot(x, params["aw"], precision=hp) + params["ab"]
    b_all = jnp.dot(x, params["bw"], precision=hp) + params["bb"]
    K = num_terms
    sol = jnp.zeros((x.shape[0], X.shape[0]), jnp.float32)
    for l in range(num_layers):
        num = jnp.dot(a_all[:, l * K:(l + 1) * K], basis, precision=hp)
        den = 1.0 + jnp.abs(jnp.dot(b_all[:, l * K:(l + 1) * K], basis, precision=hp))
        sol = sol + weights[:, l:l + 1] * (num / den)
    return sol


if __name__ == "__main__":
    # Hard-coded exp_configs (load_exp_configs not available).
    B, PARAM_DIM = 2, 4
    FC1 = FC2 = FC3 = 32
    NUM_PADE_LAYERS = 4
    H = W = 16
    NUM_TERMS = 6  # [1, u, v, u^2, uv, v^2]

    key = jax.random.PRNGKey(0)
    keys = jax.random.split(key, 16)

    # Inputs.
    x = jax.random.normal(keys[0], (B, PARAM_DIM), jnp.float32)
    uu, vv = jnp.meshgrid(
        jnp.linspace(0.0, 1.0, H), jnp.linspace(0.0, 1.0, W), indexing="ij"
    )
    X = jnp.stack([uu.reshape(-1), vv.reshape(-1)], axis=-1)  # (256, 2)

    # Deterministic synthetic parameters (weights stored (in, out): y = x @ W + b).
    def init(k, shape, scale=0.1):
        return scale * jax.random.normal(k, shape, jnp.float32)

    params = dict(
        w1=init(keys[1], (PARAM_DIM, FC1)), b1=init(keys[2], (1, FC1)),
        w2=init(keys[3], (FC1, FC2)),       b2=init(keys[4], (1, FC2)),
        w3=init(keys[5], (FC2, FC3)),       b3=init(keys[6], (1, FC3)),
        w4=init(keys[7], (FC3, NUM_PADE_LAYERS)), b4=init(keys[8], (1, NUM_PADE_LAYERS)),
        # Per-Pade-layer numerator/denominator coefficient projections, packed
        # along the output axis: (P, L*K) and (1, L*K).
        aw=init(keys[9],  (PARAM_DIM, NUM_PADE_LAYERS * NUM_TERMS)),
        ab=init(keys[10], (1, NUM_PADE_LAYERS * NUM_TERMS)),
        bw=init(keys[11], (PARAM_DIM, NUM_PADE_LAYERS * NUM_TERMS)),
        bb=init(keys[12], (1, NUM_PADE_LAYERS * NUM_TERMS)),
    )

    out = pade_generative_model_2d(
        x, X, params, num_layers=NUM_PADE_LAYERS, num_terms=NUM_TERMS
    )
    out = jax.block_until_ready(out)
    assert out.shape == (B, H * W)
    assert bool(jnp.all(jnp.isfinite(out)))

    # Loose smoke check vs the f32 reference (bf16 MXU operands + approx
    # reciprocal in the kernel -> generous tolerance).
    ref = _reference(x, X, params, num_layers=NUM_PADE_LAYERS, num_terms=NUM_TERMS)
    max_err = float(jnp.max(jnp.abs(out - ref)))
    assert max_err < 1.5e-1, f"max abs diff vs reference: {max_err}"

    print("KERNEL_OK")
</pallas_src>

<mosaic_0001>
module attributes {stable_mosaic.version = 11 : i64} {
  func.func @_pade_gen_kernel(%arg0: memref<2x5xf32, #tpu.memory_space<vmem>>, %arg1: memref<132x32xf32, #tpu.memory_space<vmem>>, %arg2: memref<5x2048xbf16, #tpu.memory_space<vmem>>, %arg3: memref<2x256xf32, #tpu.memory_space<vmem>>) attributes {dimension_semantics = [], scalar_prefetch = 0 : i64, scratch_operands = 0 : i64, tpu.core_type = #tpu.core_type<tc>} {
    %c0 = arith.constant 0 : index
    %c0_0 = arith.constant 0 : index
    %0 = vector.load %arg0[%c0, %c0_0] : memref<2x5xf32, #tpu.memory_space<vmem>>, vector<2x5xf32>
    %1 = arith.truncf %0 : vector<2x5xf32> to vector<2x5xbf16>
    %2 = vector.extract_strided_slice %1 {offsets = [0, 0], sizes = [2, 4], strides = [1, 1]} : vector<2x5xbf16> to vector<2x4xbf16>
    %c0_1 = arith.constant 0 : index
    %c0_2 = arith.constant 0 : index
    %3 = vector.load %arg1[%c0_1, %c0_2] : memref<132x32xf32, #tpu.memory_space<vmem>>, vector<4x32xf32>
    %4 = arith.truncf %3 : vector<4x32xf32> to vector<4x32xbf16>
    %c32 = arith.constant 32 : index
    %c0_3 = arith.constant 0 : index
    %5 = vector.load %arg1[%c32, %c0_3] : memref<132x32xf32, #tpu.memory_space<vmem>>, vector<32x32xf32>
    %6 = arith.truncf %5 : vector<32x32xf32> to vector<32x32xbf16>
    %c64 = arith.constant 64 : index
    %c0_4 = arith.constant 0 : index
    %7 = vector.load %arg1[%c64, %c0_4] : memref<132x32xf32, #tpu.memory_space<vmem>>, vector<32x32xf32>
    %8 = arith.truncf %7 : vector<32x32xf32> to vector<32x32xbf16>
    %c96 = arith.constant 96 : index
    %c0_5 = arith.constant 0 : index
    %9 = vector.load %arg1[%c96, %c0_5] : memref<132x32xf32, #tpu.memory_space<vmem>>, vector<32x32xf32>
    %10 = arith.truncf %9 : vector<32x32xf32> to vector<32x32xbf16>
    %c128 = arith.constant 128 : index
    %c0_6 = arith.constant 0 : index
    %11 = vector.load %arg1[%c128, %c0_6] : memref<132x32xf32, #tpu.memory_space<vmem>>, vector<1x32xf32>
    %c129 = arith.constant 129 : index
    %c0_7 = arith.constant 0 : index
    %12 = vector.load %arg1[%c129, %c0_7] : memref<132x32xf32, #tpu.memory_space<vmem>>, vector<1x32xf32>
    %c130 = arith.constant 130 : index
    %c0_8 = arith.constant 0 : index
    %13 = vector.load %arg1[%c130, %c0_8] : memref<132x32xf32, #tpu.memory_space<vmem>>, vector<1x32xf32>
    %c131 = arith.constant 131 : index
    %c0_9 = arith.constant 0 : index
    %14 = vector.load %arg1[%c131, %c0_9] : memref<132x32xf32, #tpu.memory_space<vmem>>, vector<1x32xf32>
    %cst = arith.constant dense<0.000000e+00> : vector<2x32xf32>
    %15 = tpu.matmul %2, %4, %cst {dimension_numbers = #tpu.dot_dimension_numbers<[1], [0], [0], [1], [0, 0, 1, 1], [], []>} : vector<2x4xbf16>, vector<4x32xbf16>, vector<2x32xf32> -> vector<2x32xf32>
    %16 = vector.broadcast %11 : vector<1x32xf32> to vector<2x32xf32>
    %17 = arith.addf %15, %16 : vector<2x32xf32>
    %cst_10 = arith.constant 0.000000e+00 : f32
    %18 = vector.broadcast %cst_10 : f32 to vector<2x32xf32>
    %19 = arith.cmpf oge, %17, %18 : vector<2x32xf32>
    %cst_11 = arith.constant 0.00999999977 : f32
    %20 = vector.broadcast %cst_11 : f32 to vector<2x32xf32>
    %21 = arith.mulf %20, %17 : vector<2x32xf32>
    %22 = arith.select %19, %17, %21 : vector<2x32xi1>, vector<2x32xf32>
    %23 = arith.truncf %22 : vector<2x32xf32> to vector<2x32xbf16>
    %cst_12 = arith.constant dense<0.000000e+00> : vector<2x32xf32>
    %24 = tpu.matmul %23, %6, %cst_12 {dimension_numbers = #tpu.dot_dimension_numbers<[1], [0], [0], [1], [0, 0, 1, 1], [], []>} : vector<2x32xbf16>, vector<32x32xbf16>, vector<2x32xf32> -> vector<2x32xf32>
    %25 = vector.broadcast %12 : vector<1x32xf32> to vector<2x32xf32>
    %26 = arith.addf %24, %25 : vector<2x32xf32>
    %cst_13 = arith.constant 0.000000e+00 : f32
    %27 = vector.broadcast %cst_13 : f32 to vector<2x32xf32>
    %28 = arith.cmpf oge, %26, %27 : vector<2x32xf32>
    %cst_14 = arith.constant 0.00999999977 : f32
    %29 = vector.broadcast %cst_14 : f32 to vector<2x32xf32>
    %30 = arith.mulf %29, %26 : vector<2x32xf32>
    %31 = arith.select %28, %26, %30 : vector<2x32xi1>, vector<2x32xf32>
    %32 = arith.truncf %31 : vector<2x32xf32> to vector<2x32xbf16>
    %cst_15 = arith.constant dense<0.000000e+00> : vector<2x32xf32>
    %33 = tpu.matmul %32, %8, %cst_15 {dimension_numbers = #tpu.dot_dimension_numbers<[1], [0], [0], [1], [0, 0, 1, 1], [], []>} : vector<2x32xbf16>, vector<32x32xbf16>, vector<2x32xf32> -> vector<2x32xf32>
    %34 = vector.broadcast %13 : vector<1x32xf32> to vector<2x32xf32>
    %35 = arith.addf %33, %34 : vector<2x32xf32>
    %cst_16 = arith.constant 0.000000e+00 : f32
    %36 = vector.broadcast %cst_16 : f32 to vector<2x32xf32>
    %37 = arith.cmpf oge, %35, %36 : vector<2x32xf32>
    %cst_17 = arith.constant 0.00999999977 : f32
    %38 = vector.broadcast %cst_17 : f32 to vector<2x32xf32>
    %39 = arith.mulf %38, %35 : vector<2x32xf32>
    %40 = arith.select %37, %35, %39 : vector<2x32xi1>, vector<2x32xf32>
    %41 = arith.truncf %40 : vector<2x32xf32> to vector<2x32xbf16>
    %cst_18 = arith.constant dense<0.000000e+00> : vector<2x32xf32>
    %42 = tpu.matmul %41, %10, %cst_18 {dimension_numbers = #tpu.dot_dimension_numbers<[1], [0], [0], [1], [0, 0, 1, 1], [], []>} : vector<2x32xbf16>, vector<32x32xbf16>, vector<2x32xf32> -> vector<2x32xf32>
    %43 = vector.broadcast %14 : vector<1x32xf32> to vector<2x32xf32>
    %44 = arith.addf %42, %43 : vector<2x32xf32>
    %45 = vector.extract_strided_slice %44 {offsets = [0, 0], sizes = [2, 4], strides = [1, 1]} : vector<2x32xf32> to vector<2x4xf32>
    %cst_19 = arith.constant dense<0xFF800000> : vector<2xf32>
    %46 = vector.multi_reduction <maximumf>, %45, %cst_19 [1] : vector<2x4xf32> to vector<2xf32>
    %47 = vector.shape_cast %46 : vector<2xf32> to vector<2x1xf32>
    %48 = vector.broadcast %47 : vector<2x1xf32> to vector<2x4xf32>
    %49 = arith.subf %45, %48 : vector<2x4xf32>
    %50 = math.exp %49 : vector<2x4xf32>
    %cst_20 = arith.constant dense<0.000000e+00> : vector<2xf32>
    %51 = vector.multi_reduction <add>, %50, %cst_20 [1] : vector<2x4xf32> to vector<2xf32>
    %52 = vector.shape_cast %51 : vector<2xf32> to vector<2x1xf32>
    %53 = vector.broadcast %52 : vector<2x1xf32> to vector<2x4xf32>
    %54 = arith.divf %50, %53 : vector<2x4xf32>
    %c0_21 = arith.constant 0 : index
    %c0_22 = arith.constant 0 : index
    %55 = vector.load %arg2[%c0_21, %c0_22] : memref<5x2048xbf16, #tpu.memory_space<vmem>>, vector<5x2048xbf16>
    %cst_23 = arith.constant dense<0.000000e+00> : vector<2x2048xf32>
    %56 = tpu.matmul %1, %55, %cst_23 {dimension_numbers = #tpu.dot_dimension_numbers<[1], [0], [0], [1], [0, 0, 1, 1], [], []>} : vector<2x5xbf16>, vector<5x2048xbf16>, vector<2x2048xf32> -> vector<2x2048xf32>
    %57 = vector.extract_strided_slice %56 {offsets = [0, 0], sizes = [2, 1024], strides = [1, 1]} : vector<2x2048xf32> to vector<2x1024xf32>
    %58 = vector.extract_strided_slice %56 {offsets = [0, 1024], sizes = [2, 1024], strides = [1, 1]} : vector<2x2048xf32> to vector<2x1024xf32>
    %59 = math.absf %58 : vector<2x1024xf32>
    %cst_24 = arith.constant 1.000000e+00 : f32
    %60 = vector.broadcast %cst_24 : f32 to vector<2x1024xf32>
    %61 = arith.addf %60, %59 : vector<2x1024xf32>
    %62 = tpu.reciprocal %61 {approx = true} : vector<2x1024xf32> -> vector<2x1024xf32>
    %63 = arith.mulf %57, %62 : vector<2x1024xf32>
    %64 = vector.extract_strided_slice %54 {offsets = [0, 0], sizes = [2, 1], strides = [1, 1]} : vector<2x4xf32> to vector<2x1xf32>
    %65 = vector.extract_strided_slice %63 {offsets = [0, 0], sizes = [2, 256], strides = [1, 1]} : vector<2x1024xf32> to vector<2x256xf32>
    %66 = vector.broadcast %64 : vector<2x1xf32> to vector<2x256xf32>
    %67 = arith.mulf %66, %65 : vector<2x256xf32>
    %68 = vector.extract_strided_slice %54 {offsets = [0, 1], sizes = [2, 1], strides = [1, 1]} : vector<2x4xf32> to vector<2x1xf32>
    %69 = vector.extract_strided_slice %63 {offsets = [0, 256], sizes = [2, 256], strides = [1, 1]} : vector<2x1024xf32> to vector<2x256xf32>
    %70 = vector.broadcast %68 : vector<2x1xf32> to vector<2x256xf32>
    %71 = arith.mulf %70, %69 : vector<2x256xf32>
    %72 = arith.addf %67, %71 : vector<2x256xf32>
    %73 = vector.extract_strided_slice %54 {offsets = [0, 2], sizes = [2, 1], strides = [1, 1]} : vector<2x4xf32> to vector<2x1xf32>
    %74 = vector.extract_strided_slice %63 {offsets = [0, 512], sizes = [2, 256], strides = [1, 1]} : vector<2x1024xf32> to vector<2x256xf32>
    %75 = vector.broadcast %73 : vector<2x1xf32> to vector<2x256xf32>
    %76 = arith.mulf %75, %74 : vector<2x256xf32>
    %77 = arith.addf %72, %76 : vector<2x256xf32>
    %78 = vector.extract_strided_slice %54 {offsets = [0, 3], sizes = [2, 1], strides = [1, 1]} : vector<2x4xf32> to vector<2x1xf32>
    %79 = vector.extract_strided_slice %63 {offsets = [0, 768], sizes = [2, 256], strides = [1, 1]} : vector<2x1024xf32> to vector<2x256xf32>
    %80 = vector.broadcast %78 : vector<2x1xf32> to vector<2x256xf32>
    %81 = arith.mulf %80, %79 : vector<2x256xf32>
    %82 = arith.addf %77, %81 : vector<2x256xf32>
    %c0_25 = arith.constant 0 : index
    %c0_26 = arith.constant 0 : index
    %83 = vector.load %arg3[%c0_25, %c0_26] : memref<2x256xf32, #tpu.memory_space<vmem>>, vector<2x256xf32>
    tpu.vector_store %arg3[%c0_25, %c0_26], %82 {strides = array<i32>} : memref<2x256xf32, #tpu.memory_space<vmem>>, vector<2x256xf32>,
    return
  }
}

</mosaic_0001>

<bundles_post_ra>
// kernel: tpu_custom_call.1
= control target key start
LH: loop header
LB: loop body
LE: loop exit
PB: predicated region body
PF: predicated region fallthrough
CT: control target
= control target key end

     0   :  { %vm47_vm0 = vcmask 1041408   ;;  %vm43_vm1 = vcmask 31744   ;;  %s825_s0 = inlined_call_operand.vmem [shape: f32[2,5], index: 0, kind: input, shape index: {}]   ;;  %s826_s1 = inlined_call_operand.vmem [shape: f32[132,32], index: 1, kind: input, shape index: {}]   ;;  %s827_s2 = inlined_call_operand.vmem [shape: bf16[5,2048], index: 2, kind: input, shape index: {}]   ;;  %s828_s3 = inlined_call_operand.hbm [shape: f32[2,256], index: 3, kind: output, shape index: {}]  }
   0x1   :  { %v18_v0 = vld [vmem:[%s826_s1] sm:$0xf] }
   0x2   :  { %v19_v1 = vpack.c.bf16 %v18_v0, %v18_v0  ;;  %v16_v2 = vld [vmem:[%s825_s0] sm:$0x3] }
   0x3   :  { %v662_v4 = vpack.c.bf16 %v16_v2, %v16_v2 }
   0x4   :  { %v49_v3 = vsel %vm47_vm0, %v19_v1, 0 }
   0x5   :  { %58 = vmatpush.bf16.msra.mxu0 %v49_v3 }
   0x6   :  { %8 = vsyncpa [#allocation3], 0  ;;  %v22_v5 = vld [vmem:[%s826_s1 + $0x30] sm:$0xff]  ;;  %v23_v6 = vld [vmem:[%s826_s1 + $0x38] sm:$0xff]  ;;  %vm69_vm3 = vcmask 261120   ;;  %vm128_vm6 = vcmask 25600  }
   0x7   :  { %v25_v7 = vpack.c.bf16 %v23_v6, %v22_v5  ;;  %v20_v8 = vld [vmem:[%s826_s1 + $0x20] sm:$0xff]  ;;  %v21_v9 = vld [vmem:[%s826_s1 + $0x28] sm:$0xff]  ;;  %v28_v18 = vld [vmem:[%s826_s1 + $0x50] sm:$0xff]  ;;  %vm204_vm7 = vcmask 1042432   ;;  %v629_v49 = vmov 65535   ;;  %vm201_vm8 = vcmask 39936  }
   0x8   :  { %548 = vmatmul.msk.bf16.vlgmr.msra.gmra.mxu0 %vm43_vm1, %v662_v4  ;;  %v24_v10 = vpack.c.bf16 %v21_v9, %v20_v8  ;;  %v579_v11 = vld [vmem:[%s826_s1 + $0x80] ss:$0 sm:$0xff]  ;;  %v29_v19 = vld [vmem:[%s826_s1 + $0x58] sm:$0xff]  ;;  %v27_v22 = vld [vmem:[%s826_s1 + $0x48] sm:$0xff]  ;;  %v205_v50 = vsel %vm47_vm0, 4294967295, %v629_v49  ;;  %s539_s10 = sshll.u32 %s828_s3, 4  ;;  %s540_s10 = int_to_ptr.hbm [resolvable:$true] %s539_s10 }
   0x9   :  { %79 = vmatpush.bf16.msra.mxu1 %v25_v7  ;;  %v31_v20 = vpack.c.bf16 %v29_v19, %v28_v18  ;;  %v26_v21 = vld [vmem:[%s826_s1 + $0x40] sm:$0xff]  ;;  %v34_v31 = vld [vmem:[%s826_s1 + $0x70] sm:$0xff]  ;;  %v35_v32 = vld [vmem:[%s826_s1 + $0x78] sm:$0xff]  ;;  %v721_v51 = vsel %vm204_vm7, %v205_v50, 0  ;;  %v630_v50 = vmov 2  }
   0xa   :  { %v30_v23 = vpack.c.bf16 %v27_v22, %v26_v21  ;;  %v580_v24 = vld [vmem:[%s826_s1 + $0x81] ss:$0 sm:$0xff]  ;;  %v37_v33 = vpack.c.bf16 %v35_v32, %v34_v31  ;;  %v33_v35 = vld [vmem:[%s826_s1 + $0x68] sm:$0xff]  ;;  %v581_v37 = vld [vmem:[%s826_s1 + $0x82] ss:$0 sm:$0xff]  ;;  %576 = vset.pattern.permute.xlu2 %v630_v50 }
   0xb   :  { %100 = vmatpush.bf16.msra.mxu2 %v31_v20  ;;  %v32_v34 = vld [vmem:[%s826_s1 + $0x60] sm:$0xff]  ;;  %v154_v52 = vld [vmem:[%s827_s2 + $0x8] sm:$0x77]  ;;  %v156_v58 = vld [vmem:[%s827_s2 + $0x18] sm:$0x77] }
   0xc   :  { %121 = vmatpush.bf16.msra.mxu3 %v37_v33  ;;  %v36_v36 = vpack.c.bf16 %v33_v35, %v32_v34  ;;  %v582_v44 = vld [vmem:[%s826_s1 + $0x83] ss:$0 sm:$0xff]  ;;  %v153_v53 = vld [vmem:[%s827_s2] sm:$0x77]  ;;  %v172_v54 = vunpack.c.h.b16 %v154_v52  ;;  %v171_v55 = vunpack.c.l.b16 %v154_v52  ;;  %v155_v59 = vld [vmem:[%s827_s2 + $0x10] sm:$0x77]  ;;  %v176_v60 = vunpack.c.h.b16 %v156_v58 }
   0xd   :  { %80 = vmatpush.bf16.msra.mxu1 %v24_v10  ;;  %v170_v56 = vunpack.c.h.b16 %v153_v53  ;;  %v169_v57 = vunpack.c.l.b16 %v153_v53  ;;  %v175_v61 = vunpack.c.l.b16 %v156_v58  ;;  %v174_v62 = vunpack.c.h.b16 %v155_v59  ;;  %v158_v9 = vld [vmem:[%s827_s2 + $0x28] sm:$0x77]  ;;  %v157_v22 = vld [vmem:[%s827_s2 + $0x20] sm:$0x77] }
   0xe   :  { %v173_v63 = vunpack.c.l.b16 %v155_v59  ;;  %v188_v0 = vpack.c.b16 %v172_v54, %v172_v54  ;;  %v187_v1 = vpack.c.b16 %v171_v55, %v171_v55  ;;  %v192_v5 = vpack.c.b16 %v176_v60, %v176_v60 }
   0xf   :  { %101 = vmatpush.bf16.msra.mxu2 %v30_v23  ;;  %v186_v2 = vpack.c.b16 %v170_v56, %v170_v56  ;;  %v185_v3 = vpack.c.b16 %v169_v57, %v169_v57  ;;  %v191_v6 = vpack.c.b16 %v175_v61, %v175_v61  ;;  %v190_v7 = vpack.c.b16 %v174_v62, %v174_v62 }
  0x10   :  { %122 = vmatpush.bf16.msra.mxu3 %v36_v36  ;;  %v189_v8 = vpack.c.b16 %v173_v63, %v173_v63  ;;  %v217_v10 = vand.u32 %v721_v51, %v188_v0  ;;  %v632_v52 = vmov 3  }
  0x11   :  { %v223_v18 = vand.u32 %v721_v51, %v190_v7  ;;  %578 = vset.pattern.permute.xlu0 %v632_v52 }
  0x12   :  { %v220_v19 = vand.u32 %v721_v51, %v189_v8 }
  0x14   :  { %301 = vmatpush.bf16.msrb.mxu3 %v217_v10 }
  0x85   :  { %v60_v12 = vpop.f32.mrf.mxu0 }
  0x86   :  { %v61_v13 = vadd.f32 %v579_v11, %v60_v12  ;;  %v214_v11 = vand.u32 %v721_v51, %v187_v1  ;;  %v211_v12 = vand.u32 %v721_v51, %v186_v2 }
  0x88   :  { %vm64_vm2 = vcmp.ge.f32.partialorder %v61_v13, 0.0  ;;  %v65_v14 = vmul.f32 0.01, %v61_v13  ;;  %288 = vmatpush.bf16.msrb.mxu2 %v214_v11  ;;  %275 = vmatpush.bf16.msrb.mxu1 %v211_v12 }
  0x8a   :  { %v66_v15 = vsel %vm64_vm2, %v61_v13, %v65_v14  ;;  %v208_v13 = vand.u32 %v721_v51, %v185_v3  ;;  %v229_v14 = vand.u32 %v721_v51, %v192_v5 }
  0x8b   :  { %v67_v16 = vpack.c.bf16 %v66_v15, %v66_v15  ;;  %v226_v15 = vand.u32 %v721_v51, %v191_v6 }
  0x8c   :  { %262 = vmatpush.bf16.msrb.mxu0 %v208_v13 }
  0x8d   :  { %v62_v17 = vpop.f32.mrf.mxu0  ;;  %549 = vmatmul.msk.bf16.vlgmr.msra.gmra.mxu1 %vm69_vm3, %v67_v16  ;;  %v180_v16 = vunpack.c.h.b16 %v158_v9 }
  0x8e   :  { %v179_v17 = vunpack.c.l.b16 %v158_v9  ;;  %327 = vmatpush.bf16.msra.mxu1 %v223_v18 }
  0x8f   :  { %v196_v20 = vpack.c.b16 %v180_v16, %v180_v16  ;;  %552 = vmatmul.msk.bf16.vlgmr.msrb.gmra.mxu0 %vm201_vm8, %v662_v4 }
  0x90   :  { %v195_v21 = vpack.c.b16 %v179_v17, %v179_v17  ;;  %314 = vmatpush.bf16.msra.mxu0 %v220_v19  ;;  %v633_v17 = vmov 1  }
  0x91   :  { %v241_v23 = vand.u32 %v721_v51, %v196_v20 }
  0x9d   :  { %553 = vmatmul.msk.bf16.vlgmr.msrb.gmra.mxu1 %vm201_vm8, %v662_v4 }
  0x9f   :  { %556 = vmatmul.msk.bf16.vlgmr.msra.gmra.mxu0 %vm201_vm8, %v662_v4 }
  0xad   :  { %557 = vmatmul.msk.bf16.vlgmr.msra.gmra.mxu1 %vm201_vm8, %v662_v4 }
 0x10a   :  { %v82_v25 = vpop.f32.mrf.mxu1 }
 0x10b   :  { %v83_v26 = vadd.f32 %v580_v24, %v82_v25  ;;  %v238_v24 = vand.u32 %v721_v51, %v195_v21  ;;  %v178_v25 = vunpack.c.h.b16 %v157_v22 }
 0x10c   :  { %v799_v54 = vpop.f32.mrf.mxu0 }
 0x10d   :  { %vm86_vm4 = vcmp.ge.f32.partialorder %v83_v26, 0.0  ;;  %v87_v27 = vmul.f32 0.01, %v83_v26 }
 0x10f   :  { %v88_v28 = vsel %vm86_vm4, %v83_v26, %v87_v27  ;;  %v177_v26 = vunpack.c.l.b16 %v157_v22  ;;  %v194_v27 = vpack.c.b16 %v178_v25, %v178_v25 }
 0x110   :  { %v89_v29 = vpack.c.bf16 %v88_v28, %v88_v28 }
 0x111   :  { %v193_v28 = vpack.c.b16 %v177_v26, %v177_v26 }
 0x112   :  { %v84_v30 = vpop.f32.mrf.mxu1  ;;  %550 = vmatmul.msk.bf16.vlgmr.msra.gmra.mxu2 %vm69_vm3, %v89_v29  ;;  %v160_v29 = vld [vmem:[%s827_s2 + $0x38] sm:$0x77] }
 0x113   :  { %340 = vmatpush.bf16.msra.mxu2 %v226_v15  ;;  %v235_v30 = vand.u32 %v721_v51, %v194_v27  ;;  %v232_v31 = vand.u32 %v721_v51, %v193_v28  ;;  %v184_v32 = vunpack.c.h.b16 %v160_v29  ;;  %v183_v33 = vunpack.c.l.b16 %v160_v29 }
 0x114   :  { %v266_v59 = vpop.f32.mrf.mxu0 }
 0x115   :  { %379 = vmatpush.bf16.msrb.mxu1 %v235_v30  ;;  %366 = vmatpush.bf16.msrb.mxu0 %v232_v31  ;;  %v200_v36 = vpack.c.b16 %v184_v32, %v184_v32 }
 0x118   :  { %561 = vmatmul.msk.bf16.vlgmr.msrb.gmra.mxu1 %vm201_vm8, %v662_v4  ;;  %560 = vmatmul.msk.bf16.vlgmr.msrb.gmra.mxu0 %vm201_vm8, %v662_v4 }
 0x11a   :  { %v797_v53 = vpop.f32.mrf.mxu1 }
 0x11c   :  { %v807_v5 = vpop.f32.mrf.mxu0 }
 0x122   :  { %554 = vmatmul.msk.bf16.vlgmr.msrb.gmra.mxu2 %vm201_vm8, %v662_v4  ;;  %v279_v58 = vpop.f32.mrf.mxu1 }
 0x123   :  { %392 = vmatpush.bf16.msrb.mxu2 %v238_v24 }
 0x12a   :  { %v805_v3 = vpop.f32.mrf.mxu1 }
 0x132   :  { %558 = vmatmul.msk.bf16.vlgmr.msra.gmra.mxu2 %vm201_vm8, %v662_v4  ;;  %v331_v13 = vpop.f32.mrf.mxu1 }
 0x142   :  { %562 = vmatmul.msk.bf16.vlgmr.msrb.gmra.mxu2 %vm201_vm8, %v662_v4 }
 0x195   :  { %v103_v38 = vpop.f32.mrf.mxu2  ;;  %v381_v18 = vpop.f32.mrf.mxu1 }
 0x196   :  { %v104_v39 = vadd.f32 %v581_v37, %v103_v38  ;;  %v199_v37 = vpack.c.b16 %v183_v33, %v183_v33  ;;  %v464_v22 = vand.u32 2147483647, %v381_v18 }
 0x198   :  { %vm107_vm5 = vcmp.ge.f32.partialorder %v104_v39, 0.0  ;;  %v108_v40 = vmul.f32 0.01, %v104_v39  ;;  %v472_v29 = vadd.f32 1.0, %v464_v22 }
 0x19a   :  { %v109_v41 = vsel %vm107_vm5, %v104_v39, %v108_v40  ;;  %v253_v39 = vand.u32 %v721_v51, %v200_v36  ;;  %v250_v40 = vand.u32 %v721_v51, %v199_v37 }
 0x19b   :  { %v110_v42 = vpack.c.bf16 %v109_v41, %v109_v41  ;;  %v159_v41 = vld [vmem:[%s827_s2 + $0x30] sm:$0x77]  ;;  %s634_s2 = smov [#allocation2]  }
 0x19c   :  { %444 = vmatpush.bf16.msra.mxu2 %v250_v40  ;;  %s537_s7 = sshll.u32 %s634_s2, 4  ;;  %s538_s7 = int_to_ptr.vmem [resolvable:$true] %s537_s7 }
 0x19d   :  { %v105_v43 = vpop.f32.mrf.mxu2  ;;  %551 = vmatmul.msk.bf16.vlgmr.msra.gmra.mxu3 %vm69_vm3, %v110_v42  ;;  %v182_v42 = vunpack.c.h.b16 %v159_v41  ;;  %v383_v24 = vpop.f32.mrf.mxu1 }
 0x19e   :  { %353 = vmatpush.bf16.msra.mxu3 %v229_v14  ;;  %v181_v43 = vunpack.c.l.b16 %v159_v41  ;;  %v318_v14 = vpop.f32.mrf.mxu0 }
 0x19f   :  { %566 = vmatmul.msk.bf16.vlgmr.msra.gmra.mxu2 %vm201_vm8, %v662_v4 }
 0x1a5   :  { %v803_v56 = vpop.f32.mrf.mxu2 }
 0x1a6   :  { %v368_v19 = vpop.f32.mrf.mxu0 }
 0x1ad   :  { %555 = vmatmul.msk.bf16.vlgmr.msrb.gmra.mxu3 %vm201_vm8, %v662_v4 }
 0x1ae   :  { %405 = vmatpush.bf16.msrb.mxu3 %v241_v23  ;;  %v463_v23 = vand.u32 2147483647, %v368_v19  ;;  %v370_v25 = vpop.f32.mrf.mxu0 }
 0x1b0   :  { %v471_v31 = vadd.f32 1.0, %v463_v23 }
 0x1bd   :  { %559 = vmatmul.msk.bf16.vlgmr.msra.gmra.mxu3 %vm201_vm8, %v662_v4 }
 0x1be   :  { %457 = vmatpush.bf16.msra.mxu3 %v253_v39 }
 0x1cd   :  { %563 = vmatmul.msk.bf16.vlgmr.msrb.gmra.mxu3 %vm201_vm8, %v662_v4 }
 0x1dd   :  { %567 = vmatmul.msk.bf16.vlgmr.msra.gmra.mxu3 %vm201_vm8, %v662_v4 }
 0x220   :  { %v124_v45 = vpop.f32.mrf.mxu3 }
 0x221   :  { %v716_v46 = vadd.f32 %v582_v44, %v124_v45  ;;  %v198_v44 = vpack.c.b16 %v182_v42, %v182_v42  ;;  %v197_v45 = vpack.c.b16 %v181_v43, %v181_v43 }
 0x223   :  { %v129_v47 = vsel %vm128_vm6, %v716_v46, -inf  ;;  %v244_v49 = vand.u32 %v721_v51, %v197_v45 }
 0x224   :  { %130 = vmax.xlane.f32.xlu0 %v129_v47 }
 0x225   :  { %418 = vmatpush.bf16.msra.mxu0 %v244_v49 }
 0x228   :  { %v126_v48 = vpop.f32.mrf.mxu3  ;;  %564 = vmatmul.msk.bf16.vlgmr.msra.gmra.mxu0 %vm201_vm8, %v662_v4 }
 0x229   :  { %v247_v48 = vand.u32 %v721_v51, %v198_v44  ;;  %v631_v51 = vmov 0  }
 0x22a   :  { %574 = vset.pattern.permute.xlu1 %v631_v51 }
 0x22b   :  { %431 = vmatpush.bf16.msra.mxu1 %v247_v48 }
 0x22e   :  { %565 = vmatmul.msk.bf16.vlgmr.msra.gmra.mxu1 %vm201_vm8, %v662_v4  ;;  %v292_v4 = vpop.f32.mrf.mxu2 }
 0x230   :  { %v801_v55 = vpop.f32.mrf.mxu3 }
 0x236   :  { %v811_v8 = vpop.f32.mrf.mxu2 }
 0x238   :  { %v305_v60 = vpop.f32.mrf.mxu3 }
 0x23e   :  { %v344_v16 = vpop.f32.mrf.mxu2 }
 0x240   :  { %v809_v7 = vpop.f32.mrf.mxu3 }
 0x246   :  { %v394_v21 = vpop.f32.mrf.mxu2 }
 0x247   :  { %v465_v30 = vand.u32 2147483647, %v394_v21 }
 0x248   :  { %v357_v15 = vpop.f32.mrf.mxu3 }
 0x249   :  { %v473_v33 = vadd.f32 1.0, %v465_v30 }
 0x24e   :  { %v396_v28 = vpop.f32.mrf.mxu2 }
 0x250   :  { %v407_v20 = vpop.f32.mrf.mxu3 }
 0x251   :  { %v466_v26 = vand.u32 2147483647, %v407_v20 }
 0x253   :  { %v474_v32 = vadd.f32 1.0, %v466_v26 }
 0x256   :  { %v446_v39 = vpop.f32.mrf.mxu2 }
 0x257   :  { %v469_v59 = vand.u32 2147483647, %v446_v39 }
 0x258   :  { %v409_v27 = vpop.f32.mrf.mxu3 }
 0x25e   :  { %v448_v51 = vpop.f32.mrf.mxu2 }
 0x297   :  { %v131_v34 = vpop.xlane.xlu0 %130 }
 0x298   :  { %v132_v35 = vsub.f32 %v716_v46, %v131_v34 }
 0x29a   :  { %v133_v38 = vmul.f32 1.442695, %v132_v35 }
 0x29c   :  { %583 = vpow2.f32 %v133_v38  ;;  %v459_v38 = vpop.f32.mrf.mxu3 }
 0x29d   :  { %v470_v49 = vand.u32 2147483647, %v459_v38 }
 0x2a2   :  { %v584_v46 = vpop.eup %583 }
 0x2a3   :  { %v135_v47 = vsel %vm128_vm6, %v584_v46, 0.0 }
 0x2a4   :  { %136 = vadd.xlane.f32.xlu0 %v135_v47  ;;  %v461_v50 = vpop.f32.mrf.mxu3 }
 0x2a5   :  { %v420_v35 = vpop.f32.mrf.mxu0 }
 0x2a6   :  { %v467_v37 = vand.u32 2147483647, %v420_v35 }
 0x2a8   :  { %v475_v41 = vadd.f32 1.0, %v467_v37 }
 0x2ab   :  { %v433_v34 = vpop.f32.mrf.mxu1 }
 0x2ac   :  { %v468_v36 = vand.u32 2147483647, %v433_v34 }
 0x2ae   :  { %v476_v40 = vadd.f32 1.0, %v468_v36 }
 0x2b3   :  { %v435_v45 = vpop.f32.mrf.mxu1 }
 0x317   :  { %v137_v57 = vpop.xlane.xlu0 %136 }
 0x318   :  { %585 = vrcp.f32 %v137_v57  ;;  %v149_v0 = vand.u32 2147483648, %v137_v57  ;;  %v147_v2 = vand.u32 2147483647, %v137_v57  ;;  %vm143_vm10 = vweird.f32 %v137_v57 }
 0x319   :  { %587 = vrcp.f32 %v472_v29 }
 0x31a   :  { %v150_v9 = vor.u32 1.1754944e-38, %v149_v0  ;;  %vm148_vm12 = vcmp.eq.f32.partialorder %v147_v2, 8.507059e+37  ;;  %589 = vrcp.f32 %v471_v31  ;;  %v477_v0 = vadd.f32 1.0, %v469_v59 }
 0x31b   :  { %591 = vrcp.f32 %v474_v32 }
 0x31c   :  { %593 = vrcp.f32 %v473_v33 }
 0x31d   :  { %595 = vrcp.f32 %v476_v40 }
 0x31e   :  { %v586_v61 = vpop.eup %585  ;;  %597 = vrcp.f32 %v475_v41 }
 0x31f   :  { %v139_v62 = vmul.f32 %v586_v61, %v137_v57  ;;  %vm144_vm9 = vweird.f32 %v586_v61  ;;  %v588_v42 = vpop.eup %587 }
 0x320   :  { %vm145_vm11 = vmor %vm143_vm10, %vm144_vm9  ;;  %v590_v43 = vpop.eup %589  ;;  %v488_v47 = vmul.f32 %v588_v42, %v797_v53 }
 0x321   :  { %v140_v63 = vsub.f32 1.0, %v139_v62  ;;  %v592_v44 = vpop.eup %591  ;;  %v478_v62 = vadd.f32 1.0, %v470_v49 }
 0x322   :  { %v594_v48 = vpop.eup %593  ;;  %v490_v57 = vmul.f32 %v592_v44, %v801_v55 }
 0x323   :  { %v141_v1 = vmul.f32 %v586_v61, %v140_v63  ;;  %v596_v58 = vpop.eup %595  ;;  %599 = vrcp.f32 %v478_v62 }
 0x324   :  { %v598_v60 = vpop.eup %597  ;;  %v492_v4 = vmul.f32 %v596_v58, %v805_v3  ;;  %601 = vrcp.f32 %v477_v0 }
 0x325   :  { %v142_v6 = vadd.f32 %v586_v61, %v141_v1  ;;  %v491_v63 = vmul.f32 %v598_v60, %v807_v5 }
 0x327   :  { %v146_v10 = vsel %vm145_vm11, %v586_v61, %v142_v6  ;;  %v489_v61 = vmul.f32 %v594_v48, %v803_v56 }
 0x328   :  { %v151_v11 = vsel %vm148_vm12, %v150_v9, %v146_v10 }
 0x329   :  { %v152_v12 = vmul.f32 %v584_v46, %v151_v11  ;;  %v422_v46 = vpop.f32.mrf.mxu0  ;;  %v600_v53 = vpop.eup %599 }
 0x32a   :  { %v602_v1 = vpop.eup %601  ;;  %v494_v2 = vmul.f32 %v600_v53, %v809_v7 }
 0x32b   :  { %511 = vperm.xlu2 %576, %v152_v12   ;;  %497 = vperm.xlu1 %574, %v152_v12  }
 0x333   :  { %577 = vset.pattern.permute.xlu2 %v632_v52  ;;  %575 = vset.pattern.permute.xlu1 %v633_v17  ;;  %v487_v52 = vmul.f32 %v590_v43, %v799_v54  ;;  %v493_v54 = vmul.f32 %v602_v1, %v811_v8 }
 0x334   :  { %519 = vperm.xlu2 %577, %v152_v12   ;;  %503 = vperm.xlu1 %575, %v152_v12  }
 0x385   :  { %v512_v6 = vpop.permute.xlu2 %511 }
 0x386   :  { %v514_v13 = vmul.f32 %v512_v6, %v491_v63  ;;  %v515_v14 = vmul.f32 %v512_v6, %v492_v4 }
 0x38e   :  { %v520_v56 = vpop.permute.xlu2 %519 }
 0x38f   :  { %v522_v16 = vmul.f32 %v520_v56, %v493_v54  ;;  %v523_v17 = vmul.f32 %v520_v56, %v494_v2 }
 0x39d   :  { %v498_v55 = vpop.permute.xlu1 %497 }
 0x39e   :  { %v500_v10 = vmul.f32 %v498_v55, %v487_v52  ;;  %v501_v11 = vmul.f32 %v498_v55, %v488_v47 }
 0x3a6   :  { %v504_v9 = vpop.permute.xlu1 %503 }
 0x3a7   :  { %v506_v3 = vmul.f32 %v504_v9, %v489_v61  ;;  %v507_v12 = vmul.f32 %v504_v9, %v490_v57 }
 0x3a9   :  { %v508_v5 = vadd.f32 %v506_v3, %v500_v10  ;;  %v509_v15 = vadd.f32 %v507_v12, %v501_v11 }
 0x3ab   :  { %v516_v18 = vadd.f32 %v514_v13, %v508_v5  ;;  %v517_v19 = vadd.f32 %v515_v14, %v509_v15 }
 0x3ad   :  { %v524_v20 = vadd.f32 %v522_v16, %v516_v18  ;;  %v525_v7 = vadd.f32 %v523_v17, %v517_v19 }
 0x3af   :  { %v528_v8 = vrot.slane %v525_v7, 6 }
 0x3b1   :  { %v529_v21 = vsel %vm47_vm0, %v524_v20, %v528_v8 }
 0x3b2   :  { %531 = vst [vmem:[#allocation2] sm:$0xf] %v529_v21 }
 0x3b3   :  { %542 = dma.vmem_to_hbm [thread:$0]  %s538_s7, 64, %s540_s10, [#allocation3]  }
 0x3b4   :  { %627 = dma.done.wait [#allocation3], 64  }
 0x3b5   :  { %628 = vsyncadd [#allocation3], 4294967232 }
 0x3b6   :  { %547 = vsyncpa [#allocation3], 1 }

</bundles_post_ra>
